<compile_context>
chip_gen: v7x
topology: tpu7x:2x2x1
jax: 0.10.0
libtpu: 0.0.40
codegen_flags: <defaults>
</compile_context>

<pallas_src>
import functools

import jax
import jax.numpy as jnp
from jax.experimental import pallas as pl
from jax.experimental.pallas import tpu as pltpu


def _round_up(x, m):
    return ((x + m - 1) // m) * m


def linear_sigmoid_kernel(x_ref, w_ref, b_ref, o_ref):
    # x: [TILE_B, K] bf16, w: [K, N] bf16 (pre-transposed), b: [1, N] f32
    y = jnp.dot(
        x_ref[...],
        w_ref[...],
        preferred_element_type=jnp.float32,   # f32 accumulation on the MXU
    )
    y = y + b_ref[...]                        # bias add in f32
    # Fused Sigmoid (the `new_layer`): canonical logistic -> EUP exp + recip.
    o_ref[...] = jax.nn.sigmoid(y).astype(o_ref.dtype)


@functools.partial(
    jax.jit, static_argnames=("tile_b", "out_dtype", "min_grid_steps"))
def modified_model_forward(x, w, b, *, tile_b=1024, out_dtype=jnp.bfloat16,
                           min_grid_steps=1):
    """x: [B, K] f32, w: [N, K] f32 (PyTorch Linear layout), b: [N] f32.

    min_grid_steps: set to 2 on v7x (2 TensorCores/chip) so small batches
    still produce >= 2 parallel grid steps; leave 1 on single-TC v5e/v6e.
    """
    B, K = x.shape
    N = w.shape[0]

    # Tiny-batch guard: below ~128 rows the custom-call launch + grid-step
    # overhead dominates; XLA's fused dot+sigmoid is the right path there.
    if B < 128:
        y = jnp.dot(x.astype(jnp.bfloat16),
                    jnp.transpose(w).astype(jnp.bfloat16),
                    preferred_element_type=jnp.float32) + b
        return jax.nn.sigmoid(y).astype(out_dtype)

    # One-time wrapper-side prep (fused by XLA with surrounding ops):
    #  - transpose weight to [K, N] so the kernel never transposes,
    #  - cast matmul operands to bf16 (MXU native), keep bias in f32.
    # NOTE: bf16 operands are a deliberate precision downgrade vs. f32 Linear.
    x_bf = x.astype(jnp.bfloat16)
    w_t = jnp.transpose(w).astype(jnp.bfloat16)   # [K, N]
    b2d = b.reshape(1, N).astype(jnp.float32)

    # Batch-tile sizing:
    #  * clamp to B (single resident step when B <= tile_b),
    #  * optionally split into >= min_grid_steps tiles (v7x megacore),
    #  * round partial tiles to a multiple of 16 (bf16 sublane packing)
    #    whenever the tile does not cover the whole batch.
    tb = min(tile_b, B)
    if min_grid_steps > 1:
        tb = min(tb, pl.cdiv(B, min_grid_steps))
    if tb < B:
        tb = min(_round_up(tb, 16), B)
    grid = (pl.cdiv(B, tb),)

    out_itemsize = jnp.dtype(out_dtype).itemsize
    cost = pl.CostEstimate(
        flops=2 * B * K * N,
        transcendentals=B * N,                     # one sigmoid per output
        bytes_accessed=(B * K + K * N) * 2 + N * 4 + B * N * out_itemsize,
    )

    return pl.pallas_call(
        linear_sigmoid_kernel,
        out_shape=jax.ShapeDtypeStruct((B, N), out_dtype),
        grid_spec=pltpu.PrefetchScalarGridSpec(
            num_scalar_prefetch=0,
            grid=grid,
            in_specs=[
                pl.BlockSpec((tb, K), lambda i: (i, 0)),    # batch-tiled x
                pl.BlockSpec((K, N), lambda i: (0, 0)),     # resident w.T
                pl.BlockSpec((1, N), lambda i: (0, 0)),     # resident bias
            ],
            out_specs=pl.BlockSpec((tb, N), lambda i: (i, 0)),
        ),
        compiler_params=pltpu.CompilerParams(
            # Batch tiles are independent -> shardable across v7x's two TCs.
            dimension_semantics=("parallel",),
        ),
        cost_estimate=cost,
    )(x_bf, w_t, b2d)


if __name__ == "__main__":
    key = jax.random.PRNGKey(0)
    kx, kw, kb = jax.random.split(key, 3)

    # Small but MXU-friendly shapes: >=128 rows per call, 128-wide features.
    batch, in_features, out_features = 256, 128, 128

    x = jax.random.normal(kx, (batch, in_features), dtype=jnp.float32)
    # Deterministic parameter init (mimics nn.Linear's uniform init scale).
    bound = 1.0 / jnp.sqrt(in_features)
    w = jax.random.uniform(
        kw, (out_features, in_features), minval=-bound, maxval=bound,
        dtype=jnp.float32)
    b = jax.random.uniform(
        kb, (out_features,), minval=-bound, maxval=bound, dtype=jnp.float32)

    out = modified_model_forward(x, w, b)   # defaults: tile_b=1024 -> 1 step
    jax.block_until_ready(out)

    # Reference check in plain JAX (f32). Tolerance accounts for bf16 matmul
    # operands + bf16 output (f32 accumulation keeps the error small; sigmoid
    # further compresses it).
    ref = jax.nn.sigmoid(x @ w.T + b)
    assert out.shape == (batch, out_features)
    assert jnp.allclose(out.astype(jnp.float32), ref, atol=2e-2, rtol=2e-2), (
        float(jnp.max(jnp.abs(out.astype(jnp.float32) - ref))))

    print("KERNEL_OK")
</pallas_src>

<mosaic_0001>
module attributes {stable_mosaic.version = 11 : i64} {
  func.func @linear_sigmoid_kernel(%arg0: i32, %arg1: memref<256x128xbf16, #tpu.memory_space<vmem>>, %arg2: memref<128x128xbf16, #tpu.memory_space<vmem>>, %arg3: memref<1x128xf32, #tpu.memory_space<vmem>>, %arg4: memref<256x128xbf16, #tpu.memory_space<vmem>>) attributes {dimension_semantics = [#tpu.dimension_semantics<parallel>], iteration_bounds = array<i64: 1>, scalar_prefetch = 0 : i64, scratch_operands = 0 : i64, tpu.core_type = #tpu.core_type<tc>, window_params = [{transform_indices = @transform_0, window_bounds = array<i64: 256, 128>}, {pipeline_mode = #tpu.pipeline_mode<synchronous>, transform_indices = @transform_1, window_bounds = array<i64: 128, 128>}, {pipeline_mode = #tpu.pipeline_mode<synchronous>, transform_indices = @transform_2, window_bounds = array<i64: 1, 128>}, {transform_indices = @transform_3, window_bounds = array<i64: 256, 128>}]} {
    %c0 = arith.constant 0 : index
    %c0_0 = arith.constant 0 : index
    %0 = vector.load %arg1[%c0, %c0_0] : memref<256x128xbf16, #tpu.memory_space<vmem>>, vector<256x128xbf16>
    %c0_1 = arith.constant 0 : index
    %c0_2 = arith.constant 0 : index
    %1 = vector.load %arg2[%c0_1, %c0_2] : memref<128x128xbf16, #tpu.memory_space<vmem>>, vector<128x128xbf16>
    %cst = arith.constant dense<0.000000e+00> : vector<256x128xf32>
    %2 = tpu.matmul %0, %1, %cst {dimension_numbers = #tpu.dot_dimension_numbers<[1], [0], [0], [1], [0, 0, 1, 1], [], []>} : vector<256x128xbf16>, vector<128x128xbf16>, vector<256x128xf32> -> vector<256x128xf32>
    %c0_3 = arith.constant 0 : index
    %c0_4 = arith.constant 0 : index
    %3 = vector.load %arg3[%c0_3, %c0_4] : memref<1x128xf32, #tpu.memory_space<vmem>>, vector<1x128xf32>
    %4 = vector.broadcast %3 : vector<1x128xf32> to vector<256x128xf32>
    %5 = arith.addf %2, %4 : vector<256x128xf32>
    %6 = arith.negf %5 : vector<256x128xf32>
    %7 = math.exp %6 : vector<256x128xf32>
    %cst_5 = arith.constant 1.000000e+00 : f32
    %8 = vector.broadcast %cst_5 : f32 to vector<256x128xf32>
    %9 = arith.addf %8, %7 : vector<256x128xf32>
    %10 = arith.divf %8, %9 : vector<256x128xf32>
    %11 = arith.truncf %10 : vector<256x128xf32> to vector<256x128xbf16>
    %c0_6 = arith.constant 0 : index
    %c0_7 = arith.constant 0 : index
    %12 = vector.load %arg4[%c0_6, %c0_7] : memref<256x128xbf16, #tpu.memory_space<vmem>>, vector<256x128xbf16>
    tpu.vector_store %arg4[%c0_6, %c0_7], %11 {strides = array<i32>} : memref<256x128xbf16, #tpu.memory_space<vmem>>, vector<256x128xbf16>,
    return
  }
  func.func @transform_0(%arg0: i32) -> (i32, i32) {
    %c0_i32 = arith.constant 0 : i32
    %c0_i32_0 = arith.constant 0 : i32
    return %arg0, %c0_i32 : i32, i32
  }
  func.func @transform_1(%arg0: i32) -> (i32, i32) {
    %c0_i32 = arith.constant 0 : i32
    %c0_i32_0 = arith.constant 0 : i32
    %c0_i32_1 = arith.constant 0 : i32
    return %c0_i32, %c0_i32_0 : i32, i32
  }
  func.func @transform_2(%arg0: i32) -> (i32, i32) {
    %c0_i32 = arith.constant 0 : i32
    %c0_i32_0 = arith.constant 0 : i32
    %c0_i32_1 = arith.constant 0 : i32
    return %c0_i32, %c0_i32_0 : i32, i32
  }
  func.func @transform_3(%arg0: i32) -> (i32, i32) {
    %c0_i32 = arith.constant 0 : i32
    %c0_i32_0 = arith.constant 0 : i32
    return %arg0, %c0_i32 : i32, i32
  }
}

</mosaic_0001>

<bundles_post_ra>
// kernel: modified_model_forward.1
= control target key start
LH: loop header
LB: loop body
LE: loop exit
PB: predicated region body
PF: predicated region fallthrough
CT: control target
= control target key end

     0   :  { %s1398_s0 = inlined_call_operand.vmem [shape: bf16[256,128], index: 0, kind: input, shape index: {}]   ;;  %s1399_s1 = inlined_call_operand.vmem [shape: bf16[128,128], index: 1, kind: input, shape index: {}]   ;;  %s1400_s2 = inlined_call_operand.vmem [shape: f32[1,128], index: 2, kind: input, shape index: {}]   ;;  %s1401_s3 = inlined_call_operand.hbm [shape: bf16[256,128], index: 3, kind: output, shape index: {}]  }
   0x1   :  { %v1051_v0 = vld [vmem:[%s1399_s1] sm:$0xff]   ;;  %v1052_v1 = vld [vmem:[%s1399_s1 + $0x8] sm:$0xff]   ;;  %v1053_v2 = vld [vmem:[%s1399_s1 + $0x10] sm:$0xff]  }
   0x2   :  { %984 = vmatprep.subr.bf16.mxu0 %v1051_v0  ;;  %1032 = vmatprep.subr.bf16.mxu1 %v1051_v0  ;;  %v1054_v3 = vld [vmem:[%s1399_s1 + $0x18] sm:$0xff]   ;;  %v1059_v4 = vld [vmem:[%s1398_s0] sm:$0xff]   ;;  %v1056_v7 = vld [vmem:[%s1399_s1 + $0x28] sm:$0xff]  }
   0x3   :  { %985 = vmatpush3.bf16.msra.mxu0 %v1051_v0  ;;  %1040 = vmatpush3.bf16.msra.mxu1 %v1051_v0  ;;  %v1060_v5 = vld [vmem:[%s1398_s0 + $0x40] sm:$0xff]   ;;  %v1057_v8 = vld [vmem:[%s1399_s1 + $0x30] sm:$0xff]   ;;  %v1058_v9 = vld [vmem:[%s1399_s1 + $0x38] sm:$0xff]  }
   0x4   :  { %986 = vmatprep.subr.bf16.mxu0 %v1052_v1  ;;  %1033 = vmatprep.subr.bf16.mxu1 %v1052_v1  ;;  %v1055_v6 = vld [vmem:[%s1399_s1 + $0x20] sm:$0xff]  }
   0x5   :  { %1000 = vmatprep.mubr.bf16.mxu0 %v1059_v4  ;;  %1016 = vmatprep.mubr.bf16.mxu1 %v1060_v5 }
   0x7   :  { %987 = vmatpush3.bf16.msra.mxu0 %v1052_v1  ;;  %1041 = vmatpush3.bf16.msra.mxu1 %v1052_v1 }
   0x8   :  { %988 = vmatprep.subr.bf16.mxu0 %v1053_v2  ;;  %1034 = vmatprep.subr.bf16.mxu1 %v1053_v2 }
   0xb   :  { %989 = vmatpush3.bf16.msra.mxu0 %v1053_v2  ;;  %1042 = vmatpush3.bf16.msra.mxu1 %v1053_v2 }
   0xc   :  { %990 = vmatprep.subr.bf16.mxu0 %v1054_v3  ;;  %1035 = vmatprep.subr.bf16.mxu1 %v1054_v3 }
   0xf   :  { %991 = vmatpush3.bf16.msra.mxu0 %v1054_v3  ;;  %1043 = vmatpush3.bf16.msra.mxu1 %v1054_v3 }
  0x10   :  { %992 = vmatprep.subr.bf16.mxu0 %v1055_v6  ;;  %1036 = vmatprep.subr.bf16.mxu1 %v1055_v6 }
  0x13   :  { %993 = vmatpush3.bf16.msra.mxu0 %v1055_v6  ;;  %1044 = vmatpush3.bf16.msra.mxu1 %v1055_v6 }
  0x14   :  { %994 = vmatprep.subr.bf16.mxu0 %v1056_v7  ;;  %1037 = vmatprep.subr.bf16.mxu1 %v1056_v7 }
  0x17   :  { %995 = vmatpush3.bf16.msra.mxu0 %v1056_v7  ;;  %1045 = vmatpush3.bf16.msra.mxu1 %v1056_v7 }
  0x18   :  { %996 = vmatprep.subr.bf16.mxu0 %v1057_v8  ;;  %1038 = vmatprep.subr.bf16.mxu1 %v1057_v8 }
  0x19   :  { %8 = vsyncpa [#allocation3], 0  ;;  %v1061_v10 = vld [vmem:[%s1398_s0 + $0x8] sm:$0xff]   ;;  %v1063_v12 = vld [vmem:[%s1398_s0 + $0x10] sm:$0xff]  }
  0x1a   :  { %v1062_v11 = vld [vmem:[%s1398_s0 + $0x48] sm:$0xff]   ;;  %v1064_v13 = vld [vmem:[%s1398_s0 + $0x50] sm:$0xff]   ;;  %v1065_v14 = vld [vmem:[%s1398_s0 + $0x18] sm:$0xff]  }
  0x1b   :  { %997 = vmatpush3.bf16.msra.mxu0 %v1057_v8  ;;  %1046 = vmatpush3.bf16.msra.mxu1 %v1057_v8  ;;  %v1066_v15 = vld [vmem:[%s1398_s0 + $0x58] sm:$0xff]   ;;  %v1067_v16 = vld [vmem:[%s1398_s0 + $0x20] sm:$0xff]   ;;  %v1069_v18 = vld [vmem:[%s1398_s0 + $0x28] sm:$0xff]  }
  0x1c   :  { %998 = vmatprep.subr.bf16.mxu0 %v1058_v9  ;;  %1039 = vmatprep.subr.bf16.mxu1 %v1058_v9  ;;  %v1068_v17 = vld [vmem:[%s1398_s0 + $0x60] sm:$0xff]   ;;  %v1070_v19 = vld [vmem:[%s1398_s0 + $0x68] sm:$0xff]   ;;  %v1071_v20 = vld [vmem:[%s1398_s0 + $0x30] sm:$0xff]  }
  0x1d   :  { %v1072_v21 = vld [vmem:[%s1398_s0 + $0x70] sm:$0xff]   ;;  %v1073_v22 = vld [vmem:[%s1398_s0 + $0x38] sm:$0xff]   ;;  %v1325_v24 = vld [vmem:[%s1400_s2] ss:$0 sm:$0xff] }
  0x1e   :  { %v1074_v23 = vld [vmem:[%s1398_s0 + $0x78] sm:$0xff]   ;;  %s1227_s0 = smov [#allocation2]  }
  0x1f   :  { %999 = vmatpush3.bf16.msra.mxu0 %v1058_v9  ;;  %1047 = vmatpush3.bf16.msra.mxu1 %v1058_v9  ;;  %s733_s2 = sshll.u32 %s1227_s0, 4  ;;  %s734_s2 = int_to_ptr.vmem [resolvable:$true] %s733_s2 }
  0x20   :  { %s1203_s7 = scalar_lea.vmem %s734_s2, 2048  ;;  %p1208_p1 = scmp.lt.s32.totalorder %s734_s2, %s734_s2 }
  0x21   :  { %p1204_p0 = scmp.ne.s32.totalorder %s734_s2, %s1203_s7  ;;  %p1209_p2 = scmp.lt.s32.totalorder %s1203_s7, %s1203_s7 }
  0x22   :  { %1001 = vmatmul.mubr.bf16.vlgmr.msra.gmra.mrb[0].mxu0 %v1061_v10  ;;  %1017 = vmatmul.mubr.bf16.vlgmr.msra.gmra.mrb[0].mxu1 %v1062_v11 }
  0x23   :  { %1004 = vmatprep.mubr.bf16.mxu0 %v1063_v12  ;;  %1020 = vmatprep.mubr.bf16.mxu1 %v1064_v13  ;;  %p1210_p3 = por %p1209_p2, %p1208_p1 }
  0x25   :  { %p1211_p4 = pnand %p1210_p3, %p1204_p0 }
  0x2a   :  { %1005 = vmatmul.mubr.bf16.gmra.mrb[4].mxu0 %v1065_v14  ;;  %1021 = vmatmul.mubr.bf16.gmra.mrb[4].mxu1 %v1066_v15 }
  0x2b   :  { %1008 = vmatprep.mubr.bf16.mxu0 %v1067_v16  ;;  %1024 = vmatprep.mubr.bf16.mxu1 %v1068_v17 }
  0x32   :  { %1009 = vmatmul.mubr.bf16.gmra.mrb[8].mxu0 %v1069_v18  ;;  %1025 = vmatmul.mubr.bf16.gmra.mrb[8].mxu1 %v1070_v19 }
  0x33   :  { %1012 = vmatprep.mubr.bf16.mxu0 %v1071_v20  ;;  %1028 = vmatprep.mubr.bf16.mxu1 %v1072_v21 }
  0x3a   :  { %1013 = vmatmul.mubr.bf16.gmra.mrb[12].mxu0 %v1073_v22  ;;  %1029 = vmatmul.mubr.bf16.gmra.mrb[12].mxu1 %v1074_v23 }
  0xf5   :  { %v1002_v25 = vpop.f32.mrb[0].mxu0  ;;  %v1018_v26 = vpop.f32.mrb[0].mxu1 }
  0xf6   :  { %v258_v27 = vadd.f32 %v1002_v25, %v1325_v24  ;;  %v322_v28 = vadd.f32 %v1018_v26, %v1325_v24  ;;  %v249_v29 = vpop.f32.mrb[1].mxu0  ;;  %v313_v30 = vpop.f32.mrb[1].mxu1 }
  0xf7   :  { %v250_v31 = vadd.f32 %v1325_v24, %v249_v29  ;;  %v314_v32 = vadd.f32 %v1325_v24, %v313_v30  ;;  %v1003_v33 = vpop.f32.mrb[2].mxu0  ;;  %v1019_v34 = vpop.f32.mrb[2].mxu1 }
  0xf8   :  { %v771_v35 = vmul.f32 -1.442695, %v258_v27  ;;  %v787_v36 = vmul.f32 -1.442695, %v322_v28  ;;  %v261_v37 = vadd.f32 %v1003_v33, %v1325_v24  ;;  %v325_v38 = vadd.f32 %v1019_v34, %v1325_v24  ;;  %v252_v39 = vpop.f32.mrb[3].mxu0  ;;  %v316_v40 = vpop.f32.mrb[3].mxu1 }
  0xf9   :  { %v769_v41 = vmul.f32 -1.442695, %v250_v31  ;;  %v785_v42 = vmul.f32 -1.442695, %v314_v32  ;;  %v253_v43 = vadd.f32 %v1325_v24, %v252_v39  ;;  %v317_v44 = vadd.f32 %v1325_v24, %v316_v40 }
  0xfa   :  { %1075 = vpow2.f32 %v771_v35  ;;  %v772_v45 = vmul.f32 -1.442695, %v261_v37  ;;  %v788_v46 = vmul.f32 -1.442695, %v325_v38 }
  0xfb   :  { %1077 = vpow2.f32 %v787_v36  ;;  %v770_v47 = vmul.f32 -1.442695, %v253_v43  ;;  %v786_v48 = vmul.f32 -1.442695, %v317_v44 }
  0xfc   :  { %1079 = vpow2.f32 %v769_v41 }
  0xfd   :  { %1081 = vpow2.f32 %v785_v42  ;;  %v1006_v49 = vpop.f32.mrb[4].mxu0  ;;  %v1022_v50 = vpop.f32.mrb[4].mxu1 }
  0xfe   :  { %1083 = vpow2.f32 %v772_v45  ;;  %v274_v51 = vadd.f32 %v1006_v49, %v1325_v24  ;;  %v338_v52 = vadd.f32 %v1022_v50, %v1325_v24  ;;  %v265_v53 = vpop.f32.mrb[5].mxu0  ;;  %v329_v54 = vpop.f32.mrb[5].mxu1 }
  0xff   :  { %1085 = vpow2.f32 %v788_v46  ;;  %v266_v55 = vadd.f32 %v1325_v24, %v265_v53  ;;  %v330_v56 = vadd.f32 %v1325_v24, %v329_v54  ;;  %v1007_v57 = vpop.f32.mrb[6].mxu0  ;;  %v1023_v58 = vpop.f32.mrb[6].mxu1 }
 0x100   :  { %1087 = vpow2.f32 %v770_v47  ;;  %v775_v59 = vmul.f32 -1.442695, %v274_v51  ;;  %v791_v60 = vmul.f32 -1.442695, %v338_v52  ;;  %v277_v61 = vadd.f32 %v1007_v57, %v1325_v24  ;;  %v268_v62 = vpop.f32.mrb[7].mxu0  ;;  %v332_v63 = vpop.f32.mrb[7].mxu1 }
 0x101   :  { %1089 = vpow2.f32 %v786_v48  ;;  %v773_v0 = vmul.f32 -1.442695, %v266_v55  ;;  %v789_v1 = vmul.f32 -1.442695, %v330_v56  ;;  %v341_v29 = vadd.f32 %v1023_v58, %v1325_v24 }
 0x102   :  { %1091 = vpow2.f32 %v775_v59  ;;  %v776_v2 = vmul.f32 -1.442695, %v277_v61  ;;  %v269_v32 = vadd.f32 %v1325_v24, %v268_v62  ;;  %v333_v36 = vadd.f32 %v1325_v24, %v332_v63 }
 0x103   :  { %1093 = vpow2.f32 %v791_v60  ;;  %v792_v46 = vmul.f32 -1.442695, %v341_v29 }
 0x104   :  { %v1076_v3 = vpop.eup %1075  ;;  %1095 = vpow2.f32 %v773_v0  ;;  %v774_v52 = vmul.f32 -1.442695, %v269_v32  ;;  %v790_v56 = vmul.f32 -1.442695, %v333_v36 }
 0x105   :  { %v1078_v4 = vpop.eup %1077  ;;  %v474_v5 = vadd.f32 1.0, %v1076_v3  ;;  %1097 = vpow2.f32 %v789_v1  ;;  %v1010_v6 = vpop.f32.mrb[8].mxu0 }
 0x106   :  { %v1026_v7 = vpop.f32.mrb[8].mxu1  ;;  %v1080_v8 = vpop.eup %1079  ;;  %v490_v9 = vadd.f32 1.0, %v1078_v4  ;;  %1099 = vpow2.f32 %v776_v2  ;;  %v290_v41 = vadd.f32 %v1010_v6, %v1325_v24 }
 0x107   :  { %v281_v10 = vpop.f32.mrb[9].mxu0  ;;  %v345_v11 = vpop.f32.mrb[9].mxu1  ;;  %1101 = vrcp.f32 %v474_v5  ;;  %v472_v13 = vadd.f32 1.0, %v1080_v8  ;;  %v354_v47 = vadd.f32 %v1026_v7, %v1325_v24 }
 0x108   :  { %v1082_v12 = vpop.eup %1081  ;;  %v1011_v14 = vpop.f32.mrb[10].mxu0  ;;  %1103 = vrcp.f32 %v490_v9  ;;  %v282_v53 = vadd.f32 %v1325_v24, %v281_v10  ;;  %v346_v57 = vadd.f32 %v1325_v24, %v345_v11  ;;  %v779_v59 = vmul.f32 -1.442695, %v290_v41 }
 0x109   :  { %v1027_v15 = vpop.f32.mrb[10].mxu1  ;;  %v1084_v16 = vpop.eup %1083  ;;  %v488_v17 = vadd.f32 1.0, %v1082_v12  ;;  %1105 = vrcp.f32 %v472_v13  ;;  %v293_v60 = vadd.f32 %v1011_v14, %v1325_v24  ;;  %v795_v62 = vmul.f32 -1.442695, %v354_v47 }
 0x10a   :  { %v284_v18 = vpop.f32.mrb[11].mxu0  ;;  %v1086_v19 = vpop.eup %1085  ;;  %v475_v20 = vadd.f32 1.0, %v1084_v16  ;;  %v357_v63 = vadd.f32 %v1027_v15, %v1325_v24  ;;  %v777_v1 = vmul.f32 -1.442695, %v282_v53  ;;  %v793_v5 = vmul.f32 -1.442695, %v346_v57 }
 0x10b   :  { %v348_v21 = vpop.f32.mrb[11].mxu1  ;;  %v1088_v22 = vpop.eup %1087  ;;  %1107 = vrcp.f32 %v488_v17  ;;  %v491_v23 = vadd.f32 1.0, %v1086_v19  ;;  %v285_v2 = vadd.f32 %v1325_v24, %v284_v18  ;;  %v780_v9 = vmul.f32 -1.442695, %v293_v60 }
 0x10c   :  { %v1090_v25 = vpop.eup %1089  ;;  %1109 = vrcp.f32 %v475_v20  ;;  %v473_v26 = vadd.f32 1.0, %v1088_v22  ;;  %v349_v6 = vadd.f32 %v1325_v24, %v348_v21  ;;  %v796_v13 = vmul.f32 -1.442695, %v357_v63 }
 0x10d   :  { %v1092_v27 = vpop.eup %1091  ;;  %1111 = vrcp.f32 %v491_v23  ;;  %v489_v28 = vadd.f32 1.0, %v1090_v25  ;;  %v1014_v33 = vpop.f32.mrb[12].mxu0  ;;  %v778_v17 = vmul.f32 -1.442695, %v285_v2 }
 0x10e   :  { %v1094_v30 = vpop.eup %1093  ;;  %1113 = vrcp.f32 %v473_v26  ;;  %v478_v31 = vadd.f32 1.0, %v1092_v27  ;;  %v1030_v37 = vpop.f32.mrb[12].mxu1  ;;  %v306_v10 = vadd.f32 %v1014_v33, %v1325_v24  ;;  %v794_v19 = vmul.f32 -1.442695, %v349_v6 }
 0x10f   :  { %v1096_v34 = vpop.eup %1095  ;;  %1115 = vrcp.f32 %v489_v28  ;;  %v494_v35 = vadd.f32 1.0, %v1094_v30  ;;  %v1343_v38 = vpop.f32.mrb[13].mxu0  ;;  %v370_v14 = vadd.f32 %v1030_v37, %v1325_v24 }
 0x110   :  { %v1098_v39 = vpop.eup %1097  ;;  %1117 = vrcp.f32 %v478_v31  ;;  %v476_v40 = vadd.f32 1.0, %v1096_v34  ;;  %v1346_v42 = vpop.f32.mrb[13].mxu1  ;;  %v783_v21 = vmul.f32 -1.442695, %v306_v10  ;;  %v298_v47 = vadd.f32 %v1325_v24, %v1343_v38 }
 0x111   :  { %v1348_v43 = vpop.f32.mrb[14].mxu0  ;;  %v1100_v44 = vpop.eup %1099  ;;  %1119 = vrcp.f32 %v494_v35  ;;  %v492_v45 = vadd.f32 1.0, %v1098_v39  ;;  %v799_v23 = vmul.f32 -1.442695, %v370_v14 }
 0x112   :  { %v1351_v48 = vpop.f32.mrb[14].mxu1  ;;  %v1353_v49 = vpop.f32.mrb[15].mxu0  ;;  %1121 = vrcp.f32 %v476_v40  ;;  %v479_v51 = vadd.f32 1.0, %v1100_v44  ;;  %v781_v38 = vmul.f32 -1.442695, %v298_v47 }
 0x113   :  { %v1102_v50 = vpop.eup %1101  ;;  %v1356_v54 = vpop.f32.mrb[15].mxu1  ;;  %1123 = vrcp.f32 %v492_v45 }
 0x114   :  { %v1104_v55 = vpop.eup %1103  ;;  %1125 = vrcp.f32 %v479_v51  ;;  %v365_v63 = vadd.f32 %v1325_v24, %v1356_v54 }
 0x115   :  { %v1106_v58 = vpop.eup %1105  ;;  %1127 = vpow2.f32 %v792_v46 }
 0x116   :  { %v1108_v61 = vpop.eup %1107  ;;  %1129 = vpow2.f32 %v774_v52  ;;  %v362_v52 = vadd.f32 %v1325_v24, %v1346_v42 }
 0x117   :  { %v1110_v0 = vpop.eup %1109  ;;  %1131 = vpow2.f32 %v790_v56  ;;  %v309_v56 = vadd.f32 %v1348_v43, %v1325_v24 }
 0x118   :  { %v1112_v3 = vpop.eup %1111  ;;  %v873_v4 = vpack.c.bf16 %v1110_v0, %v1102_v50  ;;  %1133 = vpow2.f32 %v779_v59  ;;  %v373_v59 = vadd.f32 %v1351_v48, %v1325_v24  ;;  %v797_v42 = vmul.f32 -1.442695, %v362_v52 }
 0x119   :  { %v1114_v7 = vpop.eup %1113  ;;  %v913_v8 = vpack.c.bf16 %v1112_v3, %v1104_v55  ;;  %1135 = vpow2.f32 %v795_v62 }
 0x11a   :  { %v1116_v11 = vpop.eup %1115  ;;  %945 = vst [vmem:[#allocation2 + $0x8] sm:$0xff] %v873_v4   ;;  %v868_v12 = vpack.c.bf16 %v1114_v7, %v1106_v58  ;;  %1137 = vpow2.f32 %v777_v1  ;;  %v784_v1 = vmul.f32 -1.442695, %v309_v56  ;;  %v800_v48 = vmul.f32 -1.442695, %v373_v59 }
 0x11b   :  { %v1118_v15 = vpop.eup %1117  ;;  %953 = vst [vmem:[#allocation2 + $0x48] sm:$0xff] %v913_v8   ;;  %v908_v16 = vpack.c.bf16 %v1116_v11, %v1108_v61  ;;  %1139 = vpow2.f32 %v793_v5  ;;  %v301_v61 = vadd.f32 %v1325_v24, %v1353_v49  ;;  %v798_v7 = vmul.f32 -1.442695, %v365_v63 }
 0x11c   :  { %v1365_v18 = vpop.eup %1119  ;;  %869 = vst [vmem:[#allocation2] sm:$0xff] %v868_v12   ;;  %1141 = vpow2.f32 %v780_v9 }
 0x11d   :  { %v1367_v20 = vpop.eup %1121  ;;  %952 = vst [vmem:[#allocation2 + $0x40] sm:$0xff] %v908_v16   ;;  %1143 = vpow2.f32 %v796_v13  ;;  %v782_v49 = vmul.f32 -1.442695, %v301_v61 }
 0x11e   :  { %v1369_v22 = vpop.eup %1123  ;;  %1145 = vpow2.f32 %v778_v17 }
 0x11f   :  { %v1126_v25 = vpop.eup %1125  ;;  %1147 = vpow2.f32 %v794_v19 }
 0x120   :  { %v1128_v26 = vpop.eup %1127  ;;  %v883_v27 = vpack.c.bf16 %v1126_v25, %v1118_v15  ;;  %1149 = vpow2.f32 %v783_v21 }
 0x121   :  { %v1130_v28 = vpop.eup %1129  ;;  %v495_v29 = vadd.f32 1.0, %v1128_v26  ;;  %1151 = vpow2.f32 %v799_v23 }
 0x122   :  { %v1132_v30 = vpop.eup %1131  ;;  %947 = vst [vmem:[#allocation2 + $0x18] sm:$0xff] %v883_v27   ;;  %v477_v31 = vadd.f32 1.0, %v1130_v28 }
 0x123   :  { %v1134_v32 = vpop.eup %1133  ;;  %1153 = vrcp.f32 %v495_v29  ;;  %v493_v33 = vadd.f32 1.0, %v1132_v30 }
 0x124   :  { %v1136_v34 = vpop.eup %1135  ;;  %1155 = vrcp.f32 %v477_v31  ;;  %v482_v35 = vadd.f32 1.0, %v1134_v32 }
 0x125   :  { %v1138_v36 = vpop.eup %1137  ;;  %1157 = vrcp.f32 %v493_v33  ;;  %v498_v37 = vadd.f32 1.0, %v1136_v34 }
 0x126   :  { %v1140_v39 = vpop.eup %1139  ;;  %1159 = vrcp.f32 %v482_v35  ;;  %v480_v40 = vadd.f32 1.0, %v1138_v36 }
 0x127   :  { %v1142_v41 = vpop.eup %1141  ;;  %1161 = vrcp.f32 %v498_v37  ;;  %v496_v44 = vadd.f32 1.0, %v1140_v39 }
 0x128   :  { %v1144_v45 = vpop.eup %1143  ;;  %1163 = vrcp.f32 %v480_v40  ;;  %v483_v46 = vadd.f32 1.0, %v1142_v41 }
 0x129   :  { %v1146_v50 = vpop.eup %1145  ;;  %1165 = vrcp.f32 %v496_v44  ;;  %v499_v51 = vadd.f32 1.0, %v1144_v45 }
 0x12a   :  { %v1148_v53 = vpop.eup %1147  ;;  %1167 = vrcp.f32 %v483_v46  ;;  %v481_v55 = vadd.f32 1.0, %v1146_v50 }
 0x12b   :  { %v1150_v57 = vpop.eup %1149  ;;  %1169 = vrcp.f32 %v499_v51  ;;  %v497_v58 = vadd.f32 1.0, %v1148_v53 }
 0x12c   :  { %v1152_v60 = vpop.eup %1151  ;;  %1171 = vrcp.f32 %v481_v55  ;;  %v486_v15 = vadd.f32 1.0, %v1150_v57 }
 0x12d   :  { %v1154_v62 = vpop.eup %1153  ;;  %1173 = vrcp.f32 %v497_v58  ;;  %v502_v17 = vadd.f32 1.0, %v1152_v60 }
 0x12e   :  { %v1156_v0 = vpop.eup %1155  ;;  %v923_v43 = vpack.c.bf16 %v1154_v62, %v1365_v18  ;;  %1175 = vpow2.f32 %v781_v38 }
 0x12f   :  { %v1158_v2 = vpop.eup %1157  ;;  %v878_v3 = vpack.c.bf16 %v1156_v0, %v1367_v20  ;;  %1177 = vpow2.f32 %v797_v42 }
 0x130   :  { %v1160_v4 = vpop.eup %1159  ;;  %955 = vst [vmem:[#allocation2 + $0x58] sm:$0xff] %v923_v43   ;;  %v918_v5 = vpack.c.bf16 %v1158_v2, %v1369_v22  ;;  %1179 = vpow2.f32 %v784_v1 }
 0x131   :  { %v1162_v6 = vpop.eup %1161  ;;  %946 = vst [vmem:[#allocation2 + $0x10] sm:$0xff] %v878_v3   ;;  %1181 = vpow2.f32 %v800_v48 }
 0x132   :  { %v1164_v8 = vpop.eup %1163  ;;  %954 = vst [vmem:[#allocation2 + $0x50] sm:$0xff] %v918_v5   ;;  %1183 = vpow2.f32 %v782_v49 }
 0x133   :  { %v1166_v24 = vpop.eup %1165  ;;  %1185 = vpow2.f32 %v798_v7 }
 0x134   :  { %v1168_v54 = vpop.eup %1167  ;;  %1187 = vrcp.f32 %v486_v15 }
 0x135   :  { %v1170_v9 = vpop.eup %1169  ;;  %v893_v10 = vpack.c.bf16 %v1168_v54, %v1160_v4  ;;  %1189 = vrcp.f32 %v502_v17 }
 0x136   :  { %v1172_v11 = vpop.eup %1171  ;;  %v933_v12 = vpack.c.bf16 %v1170_v9, %v1162_v6 }
 0x137   :  { %v1174_v13 = vpop.eup %1173  ;;  %949 = vst [vmem:[#allocation2 + $0x28] sm:$0xff] %v893_v10   ;;  %v888_v14 = vpack.c.bf16 %v1172_v11, %v1164_v8 }
 0x138   :  { %957 = vst [vmem:[#allocation2 + $0x68] sm:$0xff] %v933_v12   ;;  %v928_v16 = vpack.c.bf16 %v1174_v13, %v1166_v24  ;;  %v1176_v18 = vpop.eup %1175 }
 0x139   :  { %948 = vst [vmem:[#allocation2 + $0x20] sm:$0xff] %v888_v14   ;;  %v1178_v19 = vpop.eup %1177  ;;  %v484_v20 = vadd.f32 1.0, %v1176_v18 }
 0x13a   :  { %956 = vst [vmem:[#allocation2 + $0x60] sm:$0xff] %v928_v16   ;;  %v1180_v21 = vpop.eup %1179  ;;  %v500_v22 = vadd.f32 1.0, %v1178_v19 }
 0x13b   :  { %v1182_v23 = vpop.eup %1181  ;;  %1191 = vrcp.f32 %v484_v20  ;;  %v487_v25 = vadd.f32 1.0, %v1180_v21 }
 0x13c   :  { %v1184_v26 = vpop.eup %1183  ;;  %1193 = vrcp.f32 %v500_v22  ;;  %v503_v27 = vadd.f32 1.0, %v1182_v23 }
 0x13d   :  { %v1186_v28 = vpop.eup %1185  ;;  %1195 = vrcp.f32 %v487_v25  ;;  %v485_v29 = vadd.f32 1.0, %v1184_v26 }
 0x13e   :  { %1197 = vrcp.f32 %v503_v27  ;;  %v501_v30 = vadd.f32 1.0, %v1186_v28  ;;  %v1188_v31 = vpop.eup %1187 }
 0x13f   :  { %1199 = vrcp.f32 %v485_v29  ;;  %v1190_v32 = vpop.eup %1189 }
 0x140   :  { %1201 = vrcp.f32 %v501_v30 }
 0x145   :  { %v1192_v33 = vpop.eup %1191 }
 0x146   :  { %v1194_v34 = vpop.eup %1193 }
 0x147   :  { %v1196_v35 = vpop.eup %1195 }
 0x148   :  { %v1198_v36 = vpop.eup %1197  ;;  %v903_v37 = vpack.c.bf16 %v1196_v35, %v1188_v31 }
 0x149   :  { %v1200_v39 = vpop.eup %1199  ;;  %v943_v40 = vpack.c.bf16 %v1198_v36, %v1190_v32 }
 0x14a   :  { %v1202_v41 = vpop.eup %1201  ;;  %951 = vst [vmem:[#allocation2 + $0x38] sm:$0xff] %v903_v37   ;;  %v898_v44 = vpack.c.bf16 %v1200_v39, %v1192_v33 }
 0x14b   :  { %959 = vst [vmem:[#allocation2 + $0x78] sm:$0xff] %v943_v40   ;;  %v938_v45 = vpack.c.bf16 %v1202_v41, %v1194_v34 }
 0x14c   :  { %950 = vst [vmem:[#allocation2 + $0x30] sm:$0xff] %v898_v44  }
 0x14d   :  { %958 = vst [vmem:[#allocation2 + $0x70] sm:$0xff] %v938_v45  }
 0x14e   :  { %1214 = shalt.err (!%p1211_p4)
}
 0x14f   :  { %s1215_s10 = scalar_lea.hbm %s1401_s3, 2048 }
 0x150   :  { %p1216_p5 = scmp.ne.s32.totalorder %s1401_s3, %s1215_s10  ;;  %p1219_p6 = scmp.lt.u32.totalorder %s1215_s10, %s1401_s3 }
 0x152   :  { %p1221_p7 = pnand %p1219_p6, %p1216_p5 }
 0x154   :  { %1224 = shalt.err (!%p1221_p7)
}
 0x155   :  { %s1228_s14 = smov 64   ;;  %s1229_s15 = smov 4  }
 0x156   :  { %739 = dma.vmem_to_hbm [thread:$0]  %s734_s2, 2048, %s1401_s3, [#allocation3], %s1228_s14, %s1228_s14, %s1229_s15  }
 0x157   :  { %1225 = dma.done.wait [#allocation3], 2048  }
 0x158   :  { %1226 = vsyncadd [#allocation3], 4294965248 }
 0x159   :  { %743 = vsyncpa [#allocation3], 1 }

</bundles_post_ra>
